<compile_context>
chip_gen: v6e
topology: v6e:2x2x1
jax: 0.10.0
libtpu: 0.0.40
codegen_flags: <defaults>
</compile_context>

<pallas_src>
import functools

import jax
import jax.numpy as jnp
from jax import lax
from jax.experimental import pallas as pl
from jax.experimental.pallas import tpu as pltpu

LANE = 128


def _round_up(n, m):
    return ((n + m - 1) // m) * m


def _pad2d(a, rows, cols, dtype):
    r, c = a.shape
    return jnp.pad(a.astype(dtype), ((0, rows - r), (0, cols - c)))


def _gcn_norm_coo(edge_index, edge_weight, num_nodes):
    """PyG gcn_norm in COO form: add self-loops, norm = d^-1/2[row]*w*d^-1/2[col].

    Aggregation convention matches PyG source_to_target flow:
    out[col] += norm * x[row]  =>  A_norm[col, row] = norm.
    """
    row, col = edge_index[0], edge_index[1]
    loop = jnp.arange(num_nodes, dtype=row.dtype)
    row = jnp.concatenate([row, loop])
    col = jnp.concatenate([col, loop])
    ew = jnp.concatenate(
        [edge_weight.astype(jnp.float32), jnp.ones((num_nodes,), jnp.float32)])
    deg = jnp.zeros((num_nodes,), jnp.float32).at[col].add(ew)
    dinv = jnp.where(deg > 0, 1.0 / jnp.sqrt(deg), 0.0)
    norm = dinv[row] * ew * dinv[col]
    return row, col, norm


def build_norm_adj_padded(edge_index, edge_weight, num_nodes, n_pad):
    """Dense normalized adjacency scattered DIRECTLY into a padded bf16 buffer.

    Avoids the separate N^2 f32->bf16 pad/cast XLA pass of the previous version.
    (bf16 scatter-add on duplicate edges loses a little precision; acceptable.)
    """
    row, col, norm = _gcn_norm_coo(edge_index, edge_weight, num_nodes)
    adj = jnp.zeros((n_pad, n_pad), jnp.bfloat16)
    return adj.at[col, row].add(norm.astype(jnp.bfloat16))


# ---------------- fused kernel ----------------
# grid = (row tiles "parallel", adjacency column tiles "arbitrary")
# per (i, k):  hw_k = relu(x[k*tk : k*tk+tk] @ W1 + b1) @ Wc        (x resident in VMEM)
#              acc += A[i, k] @ hw_k
# at last k:   out[i] = log_softmax(relu(acc + bc) @ W2 + b2)  over real classes
def gcn_kernel(adj_ref, x_ref, w1_ref, b1_ref, wc_ref, bc_ref, w2_ref, b2_ref,
               out_ref, acc_ref, *, tk, num_class):
    k = pl.program_id(1)

    @pl.when(k == 0)
    def _():
        acc_ref[...] = jnp.zeros_like(acc_ref)

    # per-node feature transform recomputed on the fly from the resident x slab
    off = pl.multiple_of(k * tk, tk)
    xb = x_ref[pl.ds(off, tk), :]
    h = jnp.dot(xb, w1_ref[...], preferred_element_type=jnp.float32)
    h = jnp.maximum(h + b1_ref[...], 0.0)
    # dropout(p=0.5) -> identity in eval mode
    hw = jnp.dot(h.astype(jnp.bfloat16), wc_ref[...],
                 preferred_element_type=jnp.float32)

    acc_ref[...] += jnp.dot(adj_ref[...], hw.astype(jnp.bfloat16),
                            preferred_element_type=jnp.float32)

    @pl.when(k == pl.num_programs(1) - 1)
    def _():
        h2 = jnp.maximum(acc_ref[...] + bc_ref[...], 0.0)
        # dropout(p=0.5) -> identity in eval mode
        logits = jnp.dot(h2.astype(jnp.bfloat16), w2_ref[...],
                         preferred_element_type=jnp.float32) + b2_ref[...]
        # mask padded class lanes so they don't corrupt max / logsumexp (f32)
        class_ids = lax.broadcasted_iota(jnp.int32, logits.shape, 1)
        logits = jnp.where(class_ids < num_class, logits, -1e30)
        m = jnp.max(logits, axis=-1, keepdims=True)
        shifted = logits - m
        lse = jnp.log(jnp.sum(jnp.exp(shifted), axis=-1, keepdims=True))
        out_ref[...] = (shifted - lse).astype(out_ref.dtype)


def gcn_forward(x, edge_index, edge_weight, params, *, num_class):
    """Fused GCN forward. Returns (N, num_class) log-probabilities (f32)."""
    w1, b1, wc, bc, w2, b2 = params
    n, f = x.shape
    hidden = w1.shape[1]

    # lane-pad the tiny feature dims to full 128-lane vregs
    f_pad = _round_up(max(f, 1), LANE)
    h_pad = _round_up(max(hidden, 1), LANE)
    c_pad = _round_up(max(num_class, 1), LANE)

    # adjacency reduction tile (last grid axis): big tiles ~ HBM roofline
    tk = min(1024, _round_up(n, LANE))
    n_pad = _round_up(n, tk)               # multiple of tk (and of 128)
    # row tile: guarantee >= 2 "parallel" iterations so both v7x TensorCores work
    tm = tk if n_pad // tk >= 2 else max(n_pad // 2, 8)   # n_pad//2 is 64-aligned

    # normalized adjacency built directly as padded bf16 (no pad/cast pass)
    adjp = build_norm_adj_padded(edge_index, edge_weight, n, n_pad)
    xp = _pad2d(x, n_pad, f_pad, jnp.bfloat16)
    w1p = _pad2d(w1, f_pad, h_pad, jnp.bfloat16)
    b1p = _pad2d(b1, 1, h_pad, jnp.float32)
    wcp = _pad2d(wc, h_pad, h_pad, jnp.bfloat16)
    bcp = _pad2d(bc, 1, h_pad, jnp.float32)
    w2p = _pad2d(w2, h_pad, c_pad, jnp.bfloat16)
    b2p = _pad2d(b2, 1, c_pad, jnp.float32)

    # VMEM budget: double-buffered A tiles + resident x + acc + out + weights.
    vmem_est = (2 * tm * tk * 2            # A tiles (bf16, double-buffered)
                + 2 * n_pad * f_pad * 2    # resident x slab (bf16)
                + tm * h_pad * 4           # acc scratch
                + 2 * tm * c_pad * 4       # output tile
                + 8 * h_pad * h_pad * 4)   # weights/biases (generous)
    # keep headroom for v7x's 64 MiB physical VMEM
    vmem_limit = int(min(max(vmem_est + (4 << 20), 32 << 20), 48 << 20))

    out_pad = pl.pallas_call(
        functools.partial(gcn_kernel, tk=tk, num_class=num_class),
        out_shape=jax.ShapeDtypeStruct((n_pad, c_pad), jnp.float32),
        grid=(n_pad // tm, n_pad // tk),
        in_specs=[
            pl.BlockSpec((tm, tk), lambda i, k: (i, k)),        # A tile (streamed)
            pl.BlockSpec((n_pad, f_pad), lambda i, k: (0, 0)),  # x: VMEM-resident
            pl.BlockSpec((f_pad, h_pad), lambda i, k: (0, 0)),  # W1
            pl.BlockSpec((1, h_pad), lambda i, k: (0, 0)),      # b1
            pl.BlockSpec((h_pad, h_pad), lambda i, k: (0, 0)),  # Wc
            pl.BlockSpec((1, h_pad), lambda i, k: (0, 0)),      # bc
            pl.BlockSpec((h_pad, c_pad), lambda i, k: (0, 0)),  # W2
            pl.BlockSpec((1, c_pad), lambda i, k: (0, 0)),      # b2
        ],
        out_specs=pl.BlockSpec((tm, c_pad), lambda i, k: (i, 0)),
        scratch_shapes=[pltpu.VMEM((tm, h_pad), jnp.float32)],
        compiler_params=pltpu.CompilerParams(
            dimension_semantics=("parallel", "arbitrary"),
            vmem_limit_bytes=vmem_limit),
    )(adjp, xp, w1p, b1p, wcp, bcp, w2p, b2p)

    # lane-dense kernel output; slice the real nodes / classes in the wrapper
    return out_pad[:n, :num_class]


# ---------------- pure-JAX f32 reference (for validation only) ----------------
def gcn_reference(x, edge_index, edge_weight, params, *, num_class):
    w1, b1, wc, bc, w2, b2 = params
    n = x.shape[0]
    row, col, norm = _gcn_norm_coo(edge_index, edge_weight, n)
    adj = jnp.zeros((n, n), jnp.float32).at[col, row].add(norm)
    h = jax.nn.relu(x @ w1 + b1)
    h = jax.nn.relu(adj @ (h @ wc) + bc)
    logits = h @ w2 + b2
    return jax.nn.log_softmax(logits, axis=-1)


def init_params(key, features_num=16, hidden=16, num_class=2):
    """Deterministic synthetic weights matching the module's shapes.

    first_lin: Linear(features_num, hidden)
    convs[0]:  GCNConv(hidden, hidden)   (conv1 exists but is unused in forward)
    lin2:      Linear(hidden, num_class)
    """
    k1, k2, k3, k4, k5, k6 = jax.random.split(key, 6)
    w1 = jax.random.normal(k1, (features_num, hidden), jnp.float32) * 0.1
    b1 = jax.random.normal(k2, (1, hidden), jnp.float32) * 0.1
    wc = jax.random.normal(k3, (hidden, hidden), jnp.float32) * 0.1
    bc = jax.random.normal(k4, (1, hidden), jnp.float32) * 0.1
    w2 = jax.random.normal(k5, (hidden, num_class), jnp.float32) * 0.1
    b2 = jax.random.normal(k6, (1, num_class), jnp.float32) * 0.1
    return (w1, b1, wc, bc, w2, b2)


if __name__ == "__main__":
    key = jax.random.PRNGKey(0)
    k_x, k_e, k_w, k_p = jax.random.split(key, 4)

    num_nodes = 32
    features_num = 16
    hidden = 16
    num_class = 2
    num_edges = 64

    # node features (N, F)
    x = jax.random.normal(k_x, (num_nodes, features_num), jnp.float32)
    # random directed edges + positive edge weights
    edge_index = jax.random.randint(k_e, (2, num_edges), 0, num_nodes, jnp.int32)
    edge_weight = jax.random.uniform(k_w, (num_edges,), jnp.float32, 0.5, 1.5)
    params = init_params(k_p, features_num, hidden, num_class)

    fwd = jax.jit(functools.partial(gcn_forward, num_class=num_class))
    out = jax.block_until_ready(fwd(x, edge_index, edge_weight, params))

    assert out.shape == (num_nodes, num_class)
    # rows of log_softmax should exp-sum to ~1
    assert bool(jnp.allclose(jnp.sum(jnp.exp(out), axis=-1), 1.0, atol=1e-3))
    # validate against a pure-JAX f32 reference (bf16 MXU drift tolerance)
    ref = gcn_reference(x, edge_index, edge_weight, params, num_class=num_class)
    assert bool(jnp.allclose(out, ref, atol=5e-2, rtol=5e-2)), float(
        jnp.max(jnp.abs(out - ref)))
    print("KERNEL_OK")
</pallas_src>

<mosaic_0001>
module attributes {stable_mosaic.version = 11 : i64} {
  func.func private @main(%arg0: i32) attributes {dimension_semantics = [#tpu.dimension_semantics<core_parallel>], iteration_bounds = array<i64: 2>, tpu.core_type = #tpu.core_type<sc_scalar_subcore>, window_params = []} {
    return
  }
}

module attributes {stable_mosaic.version = 11 : i64} {
  func.func private @main(%arg0: i32) attributes {dimension_semantics = [#tpu.dimension_semantics<core_parallel>], iteration_bounds = array<i64: 2>, tpu.core_type = #tpu.core_type<sc_scalar_subcore>, window_params = []} {
    return
  }
}

module attributes {stable_mosaic.version = 11 : i64} {
  func.func @gcn_kernel(%arg0: i32, %arg1: i32, %arg2: memref<64x128xbf16, #tpu.memory_space<vmem>>, %arg3: memref<128x128xbf16, #tpu.memory_space<vmem>>, %arg4: memref<128x128xbf16, #tpu.memory_space<vmem>>, %arg5: memref<1x128xf32, #tpu.memory_space<vmem>>, %arg6: memref<128x128xbf16, #tpu.memory_space<vmem>>, %arg7: memref<1x128xf32, #tpu.memory_space<vmem>>, %arg8: memref<128x128xbf16, #tpu.memory_space<vmem>>, %arg9: memref<1x128xf32, #tpu.memory_space<vmem>>, %arg10: memref<64x128xf32, #tpu.memory_space<vmem>>, %arg11: memref<64x128xf32, #tpu.memory_space<vmem>>) attributes {dimension_semantics = [#tpu.dimension_semantics<parallel>, #tpu.dimension_semantics<arbitrary>], iteration_bounds = array<i64: 2, 1>, scalar_prefetch = 0 : i64, scratch_operands = 1 : i64, tpu.core_type = #tpu.core_type<tc>, window_params = [{transform_indices = @transform_0, window_bounds = array<i64: 64, 128>}, {pipeline_mode = #tpu.pipeline_mode<synchronous>, transform_indices = @transform_1, window_bounds = array<i64: 128, 128>}, {pipeline_mode = #tpu.pipeline_mode<synchronous>, transform_indices = @transform_2, window_bounds = array<i64: 128, 128>}, {pipeline_mode = #tpu.pipeline_mode<synchronous>, transform_indices = @transform_3, window_bounds = array<i64: 1, 128>}, {pipeline_mode = #tpu.pipeline_mode<synchronous>, transform_indices = @transform_4, window_bounds = array<i64: 128, 128>}, {pipeline_mode = #tpu.pipeline_mode<synchronous>, transform_indices = @transform_5, window_bounds = array<i64: 1, 128>}, {pipeline_mode = #tpu.pipeline_mode<synchronous>, transform_indices = @transform_6, window_bounds = array<i64: 128, 128>}, {pipeline_mode = #tpu.pipeline_mode<synchronous>, transform_indices = @transform_7, window_bounds = array<i64: 1, 128>}, {transform_indices = @transform_8, window_bounds = array<i64: 64, 128>}]} {
    %c0_i32 = arith.constant 0 : i32
    %0 = arith.cmpi eq, %arg1, %c0_i32 : i32
    %1 = arith.extui %0 : i1 to i32
    %c0_i32_0 = arith.constant 0 : i32
    %2 = arith.cmpi ne, %1, %c0_i32_0 : i32
    scf.if %2 {
      %cst_18 = arith.constant 0.000000e+00 : f32
      %26 = vector.broadcast %cst_18 : f32 to vector<64x128xf32>
      %c0_19 = arith.constant 0 : index
      %c0_20 = arith.constant 0 : index
      %27 = vector.load %arg11[%c0_19, %c0_20] : memref<64x128xf32, #tpu.memory_space<vmem>>, vector<64x128xf32>
      tpu.vector_store %arg11[%c0_19, %c0_20], %26 {strides = array<i32>} : memref<64x128xf32, #tpu.memory_space<vmem>>, vector<64x128xf32>,
    } else {
    }
    %c128_i32 = arith.constant 128 : i32
    %3 = arith.muli %arg1, %c128_i32 : i32
    %4 = tpu.assume_multiple %3, 128 : i32
    %5 = arith.index_cast %4 : i32 to index
    %c0 = arith.constant 0 : index
    %6 = vector.load %arg3[%5, %c0] : memref<128x128xbf16, #tpu.memory_space<vmem>>, vector<128x128xbf16>
    %c0_1 = arith.constant 0 : index
    %c0_2 = arith.constant 0 : index
    %7 = vector.load %arg4[%c0_1, %c0_2] : memref<128x128xbf16, #tpu.memory_space<vmem>>, vector<128x128xbf16>
    %cst = arith.constant dense<0.000000e+00> : vector<128x128xf32>
    %8 = tpu.matmul %6, %7, %cst {dimension_numbers = #tpu.dot_dimension_numbers<[1], [0], [0], [1], [0, 0, 1, 1], [], []>} : vector<128x128xbf16>, vector<128x128xbf16>, vector<128x128xf32> -> vector<128x128xf32>
    %c0_3 = arith.constant 0 : index
    %c0_4 = arith.constant 0 : index
    %9 = vector.load %arg5[%c0_3, %c0_4] : memref<1x128xf32, #tpu.memory_space<vmem>>, vector<1x128xf32>
    %10 = vector.broadcast %9 : vector<1x128xf32> to vector<128x128xf32>
    %11 = arith.addf %8, %10 : vector<128x128xf32>
    %cst_5 = arith.constant 0.000000e+00 : f32
    %12 = vector.broadcast %cst_5 : f32 to vector<128x128xf32>
    %13 = arith.maximumf %11, %12 : vector<128x128xf32>
    %14 = arith.truncf %13 : vector<128x128xf32> to vector<128x128xbf16>
    %c0_6 = arith.constant 0 : index
    %c0_7 = arith.constant 0 : index
    %15 = vector.load %arg6[%c0_6, %c0_7] : memref<128x128xbf16, #tpu.memory_space<vmem>>, vector<128x128xbf16>
    %cst_8 = arith.constant dense<0.000000e+00> : vector<128x128xf32>
    %16 = tpu.matmul %14, %15, %cst_8 {dimension_numbers = #tpu.dot_dimension_numbers<[1], [0], [0], [1], [0, 0, 1, 1], [], []>} : vector<128x128xbf16>, vector<128x128xbf16>, vector<128x128xf32> -> vector<128x128xf32>
    %c0_9 = arith.constant 0 : index
    %c0_10 = arith.constant 0 : index
    %17 = vector.load %arg11[%c0_9, %c0_10] : memref<64x128xf32, #tpu.memory_space<vmem>>, vector<64x128xf32>
    %c0_11 = arith.constant 0 : index
    %c0_12 = arith.constant 0 : index
    %18 = vector.load %arg2[%c0_11, %c0_12] : memref<64x128xbf16, #tpu.memory_space<vmem>>, vector<64x128xbf16>
    %19 = arith.truncf %16 : vector<128x128xf32> to vector<128x128xbf16>
    %cst_13 = arith.constant dense<0.000000e+00> : vector<64x128xf32>
    %20 = tpu.matmul %18, %19, %cst_13 {dimension_numbers = #tpu.dot_dimension_numbers<[1], [0], [0], [1], [0, 0, 1, 1], [], []>} : vector<64x128xbf16>, vector<128x128xbf16>, vector<64x128xf32> -> vector<64x128xf32>
    %21 = arith.addf %17, %20 : vector<64x128xf32>
    %c0_14 = arith.constant 0 : index
    %c0_15 = arith.constant 0 : index
    %22 = vector.load %arg11[%c0_14, %c0_15] : memref<64x128xf32, #tpu.memory_space<vmem>>, vector<64x128xf32>
    tpu.vector_store %arg11[%c0_14, %c0_15], %21 {strides = array<i32>} : memref<64x128xf32, #tpu.memory_space<vmem>>, vector<64x128xf32>,
    %c0_i32_16 = arith.constant 0 : i32
    %23 = arith.cmpi eq, %arg1, %c0_i32_16 : i32
    %24 = arith.extui %23 : i1 to i32
    %c0_i32_17 = arith.constant 0 : i32
    %25 = arith.cmpi ne, %24, %c0_i32_17 : i32
    scf.if %25 {
      %c0_18 = arith.constant 0 : index
      %c0_19 = arith.constant 0 : index
      %26 = vector.load %arg11[%c0_18, %c0_19] : memref<64x128xf32, #tpu.memory_space<vmem>>, vector<64x128xf32>
      %c0_20 = arith.constant 0 : index
      %c0_21 = arith.constant 0 : index
      %27 = vector.load %arg7[%c0_20, %c0_21] : memref<1x128xf32, #tpu.memory_space<vmem>>, vector<1x128xf32>
      %28 = vector.broadcast %27 : vector<1x128xf32> to vector<64x128xf32>
      %29 = arith.addf %26, %28 : vector<64x128xf32>
      %cst_22 = arith.constant 0.000000e+00 : f32
      %30 = vector.broadcast %cst_22 : f32 to vector<64x128xf32>
      %31 = arith.maximumf %29, %30 : vector<64x128xf32>
      %32 = arith.truncf %31 : vector<64x128xf32> to vector<64x128xbf16>
      %c0_23 = arith.constant 0 : index
      %c0_24 = arith.constant 0 : index
      %33 = vector.load %arg8[%c0_23, %c0_24] : memref<128x128xbf16, #tpu.memory_space<vmem>>, vector<128x128xbf16>
      %cst_25 = arith.constant dense<0.000000e+00> : vector<64x128xf32>
      %34 = tpu.matmul %32, %33, %cst_25 {dimension_numbers = #tpu.dot_dimension_numbers<[1], [0], [0], [1], [0, 0, 1, 1], [], []>} : vector<64x128xbf16>, vector<128x128xbf16>, vector<64x128xf32> -> vector<64x128xf32>
      %c0_26 = arith.constant 0 : index
      %c0_27 = arith.constant 0 : index
      %35 = vector.load %arg9[%c0_26, %c0_27] : memref<1x128xf32, #tpu.memory_space<vmem>>, vector<1x128xf32>
      %36 = vector.broadcast %35 : vector<1x128xf32> to vector<64x128xf32>
      %37 = arith.addf %34, %36 : vector<64x128xf32>
      %38 = tpu.iota {dimensions = array<i32: 1>} : vector<64x128xi32>
      %c2_i32 = arith.constant 2 : i32
      %39 = vector.broadcast %c2_i32 : i32 to vector<64x128xi32>
      %40 = arith.cmpi slt, %38, %39 : vector<64x128xi32>
      %cst_28 = arith.constant -1.000000e+30 : f32
      %41 = vector.broadcast %cst_28 : f32 to vector<64x128xf32>
      %42 = arith.select %40, %37, %41 : vector<64x128xi1>, vector<64x128xf32>
      %cst_29 = arith.constant dense<0xFF800000> : vector<64xf32>
      %43 = vector.multi_reduction <maximumf>, %42, %cst_29 [1] : vector<64x128xf32> to vector<64xf32>
      %44 = vector.shape_cast %43 : vector<64xf32> to vector<64x1xf32>
      %45 = vector.broadcast %44 : vector<64x1xf32> to vector<64x128xf32>
      %46 = arith.subf %42, %45 : vector<64x128xf32>
      %47 = math.exp %46 : vector<64x128xf32>
      %cst_30 = arith.constant dense<0.000000e+00> : vector<64xf32>
      %48 = vector.multi_reduction <add>, %47, %cst_30 [1] : vector<64x128xf32> to vector<64xf32>
      %49 = vector.shape_cast %48 : vector<64xf32> to vector<64x1xf32>
      %50 = math.log %49 : vector<64x1xf32>
      %51 = vector.broadcast %50 : vector<64x1xf32> to vector<64x128xf32>
      %52 = arith.subf %46, %51 : vector<64x128xf32>
      %c0_31 = arith.constant 0 : index
      %c0_32 = arith.constant 0 : index
      %53 = vector.load %arg10[%c0_31, %c0_32] : memref<64x128xf32, #tpu.memory_space<vmem>>, vector<64x128xf32>
      tpu.vector_store %arg10[%c0_31, %c0_32], %52 {strides = array<i32>} : memref<64x128xf32, #tpu.memory_space<vmem>>, vector<64x128xf32>,
    } else {
    }
    return
  }
  func.func @transform_0(%arg0: i32, %arg1: i32) -> (i32, i32) {
    %c0_i32 = arith.constant 0 : i32
    return %arg0, %arg1 : i32, i32
  }
  func.func @transform_1(%arg0: i32, %arg1: i32) -> (i32, i32) {
    %c0_i32 = arith.constant 0 : i32
    %c0_i32_0 = arith.constant 0 : i32
    %c0_i32_1 = arith.constant 0 : i32
    return %c0_i32, %c0_i32_0 : i32, i32
  }
  func.func @transform_2(%arg0: i32, %arg1: i32) -> (i32, i32) {
    %c0_i32 = arith.constant 0 : i32
    %c0_i32_0 = arith.constant 0 : i32
    %c0_i32_1 = arith.constant 0 : i32
    return %c0_i32, %c0_i32_0 : i32, i32
  }
  func.func @transform_3(%arg0: i32, %arg1: i32) -> (i32, i32) {
    %c0_i32 = arith.constant 0 : i32
    %c0_i32_0 = arith.constant 0 : i32
    %c0_i32_1 = arith.constant 0 : i32
    return %c0_i32, %c0_i32_0 : i32, i32
  }
  func.func @transform_4(%arg0: i32, %arg1: i32) -> (i32, i32) {
    %c0_i32 = arith.constant 0 : i32
    %c0_i32_0 = arith.constant 0 : i32
    %c0_i32_1 = arith.constant 0 : i32
    return %c0_i32, %c0_i32_0 : i32, i32
  }
  func.func @transform_5(%arg0: i32, %arg1: i32) -> (i32, i32) {
    %c0_i32 = arith.constant 0 : i32
    %c0_i32_0 = arith.constant 0 : i32
    %c0_i32_1 = arith.constant 0 : i32
    return %c0_i32, %c0_i32_0 : i32, i32
  }
  func.func @transform_6(%arg0: i32, %arg1: i32) -> (i32, i32) {
    %c0_i32 = arith.constant 0 : i32
    %c0_i32_0 = arith.constant 0 : i32
    %c0_i32_1 = arith.constant 0 : i32
    return %c0_i32, %c0_i32_0 : i32, i32
  }
  func.func @transform_7(%arg0: i32, %arg1: i32) -> (i32, i32) {
    %c0_i32 = arith.constant 0 : i32
    %c0_i32_0 = arith.constant 0 : i32
    %c0_i32_1 = arith.constant 0 : i32
    return %c0_i32, %c0_i32_0 : i32, i32
  }
  func.func @transform_8(%arg0: i32, %arg1: i32) -> (i32, i32) {
    %c0_i32 = arith.constant 0 : i32
    %c0_i32_0 = arith.constant 0 : i32
    return %arg0, %c0_i32 : i32, i32
  }
}

</mosaic_0001>

<bundles_post_ra>
// kernel: gcn_forward.1
= control target key start
LH: loop header
LB: loop body
LE: loop exit
PB: predicated region body
PF: predicated region fallthrough
CT: control target
= control target key end

     0   :  { %s1618_s27 = smov 0   ;;  %s1620_s28 = smov 0   ;;  %s1819_s0 = inlined_call_operand.vmem [shape: bf16[128,128], index: 0, kind: input, shape index: {}]   ;;  %s1820_s1 = inlined_call_operand.vmem [shape: bf16[128,128], index: 1, kind: input, shape index: {}]   ;;  %s1821_s2 = inlined_call_operand.vmem [shape: bf16[128,128], index: 2, kind: input, shape index: {}]   ;;  %s1822_s3 = inlined_call_operand.vmem [shape: f32[1,128], index: 3, kind: input, shape index: {}]   ;;  %s1823_s4 = inlined_call_operand.vmem [shape: bf16[128,128], index: 4, kind: input, shape index: {}]   ;;  %s1824_s5 = inlined_call_operand.vmem [shape: f32[1,128], index: 5, kind: input, shape index: {}]   ;;  %s1825_s6 = inlined_call_operand.vmem [shape: bf16[128,128], index: 6, kind: input, shape index: {}]   ;;  %s1826_s7 = inlined_call_operand.vmem [shape: f32[1,128], index: 7, kind: input, shape index: {}]   ;;  %s1827_s8 = inlined_call_operand.vmem [shape: f32[128,128], index: 8, kind: output, shape index: {}]  }
   0x1   :  { %s1622_s29 = smov 0  }
   0x2 LB: > { %s30_s30 = sadd.s32 1, %s1567_s28  ;;  %p1243_p0 = scmp.ge.s32.totalorder %s1571_s29, 1  ;;  %s1571_s29 = sphi %s1622_s29, %s18_s29   ;;  %s1567_s28 = sphi %s1620_s28, %s1829_s28   ;;  %s1563_s27 = sphi %s1618_s27, %s1828_s27  }
   0x3   : > { %p32_p1 = scmp.ge.s32.totalorder %s30_s30, 2  ;;  %p280_p2 = scmp.lt.s32.totalorder %s1571_s29, 3 }
   0x5   : > { %s1831_s30 = smov (%p32_p1, %s30_s30), 0  ;;  %p281_p3 = pnand %p1243_p0, %p280_p2 }
   0x6   : > { %s1244_s23 = sshll.u32 (!%p281_p3), %s1563_s27, 3 }
   0x7   : > { %284 = sbr.rel (%p281_p3) target bundleno = 1239 (0x4d7), region = 52  ;;  %p318_p4 = scmp.lt.s32.totalorder (!%p281_p3), %s1244_s23, 15 }
   0xc   : > { %v1481_v0 = vld [vmem:[%s1821_s2 + $0x38] sm:$0xff]   ;;  %v1482_v1 = vld [vmem:[%s1821_s2 + $0x30] sm:$0xff]   ;;  %v1483_v2 = vld [vmem:[%s1821_s2 + $0x28] sm:$0xff]   ;;  %s1833_s23 = smov (!%p318_p4, %s1244_s23), 15 }
   0xd   : > { %1345 = vmatprep.subr.bf16.mxu0 %v1481_v0  ;;  %v1484_v3 = vld [vmem:[%s1821_s2 + $0x20] sm:$0xff]   ;;  %v1485_v5 = vld [vmem:[%s1821_s2 + $0x18] sm:$0xff]   ;;  %v1486_v6 = vld [vmem:[%s1821_s2 + $0x10] sm:$0xff]   ;;  %s1245_s24 = sshll.u32 %s1833_s23, 2  ;;  %s1247_s12 = sshll.u32 %s1833_s23, 3 }
   0xe   : > { %1346 = vmatpush3.bf16.msra.mxu0 %v1481_v0  ;;  %v1489_v4 = vld [vmem:[%s1820_s1] sm:$0xff]   ;;  %v1497_v7 = vld [vmem:[%s1823_s4 + $0x38] sm:$0xff]   ;;  %v1498_v8 = vld [vmem:[%s1823_s4 + $0x30] sm:$0xff]   ;;  %s1720_s9 = scalar_lea.vmem %s1819_s0, %s1245_s24  ;;  %s1792_s14 = scalar_lea.vmem %s1827_s8, %s1247_s12 }
   0xf   : > { %1347 = vmatprep.subr.bf16.mxu0 %v1482_v1  ;;  %1361 = vmatprep.mubr.bf16.mxu0 %v1489_v4  ;;  %v1487_v9 = vld [vmem:[%s1821_s2 + $0x8] sm:$0xff]   ;;  %v1488_v11 = vld [vmem:[%s1821_s2] sm:$0xff]   ;;  %v1501_v13 = vld [vmem:[%s1823_s4 + $0x18] sm:$0xff]  }
  0x10   : > { %1377 = vmatprep.subr.bf16.mxu1 %v1497_v7  ;;  %v1499_v10 = vld [vmem:[%s1823_s4 + $0x28] sm:$0xff]   ;;  %v1500_v12 = vld [vmem:[%s1823_s4 + $0x20] sm:$0xff]   ;;  %v1491_v15 = vld [vmem:[%s1820_s1 + $0x10] sm:$0xff]  }
  0x11   : > { %1378 = vmatpush3.bf16.msra.mxu1 %v1497_v7  ;;  %v1490_v14 = vld [vmem:[%s1820_s1 + $0x8] sm:$0xff]   ;;  %v1492_v16 = vld [vmem:[%s1820_s1 + $0x18] sm:$0xff]   ;;  %v1493_v17 = vld [vmem:[%s1820_s1 + $0x20] sm:$0xff]  }
  0x12   : > { %1348 = vmatpush3.bf16.msra.mxu0 %v1482_v1  ;;  %1379 = vmatprep.subr.bf16.mxu1 %v1498_v8  ;;  %v1494_v18 = vld [vmem:[%s1820_s1 + $0x28] sm:$0xff]   ;;  %v1495_v19 = vld [vmem:[%s1820_s1 + $0x30] sm:$0xff]   ;;  %v1496_v20 = vld [vmem:[%s1820_s1 + $0x38] sm:$0xff]  }
  0x13   : > { %1349 = vmatprep.subr.bf16.mxu0 %v1483_v2  ;;  %v1502_v21 = vld [vmem:[%s1823_s4 + $0x10] sm:$0xff]   ;;  %v1503_v22 = vld [vmem:[%s1823_s4 + $0x8] sm:$0xff]   ;;  %v1504_v23 = vld [vmem:[%s1823_s4] sm:$0xff]  }
  0x14   : > { %v1248_v26 = vld [vmem:[%s1822_s3] ss:$0 sm:$0xff] }
  0x15   : > { %1380 = vmatpush3.bf16.msra.mxu1 %v1498_v8 }
  0x16   : > { %1350 = vmatpush3.bf16.msra.mxu0 %v1483_v2  ;;  %1381 = vmatprep.subr.bf16.mxu1 %v1499_v10 }
  0x17   : > { %1351 = vmatprep.subr.bf16.mxu0 %v1484_v3 }
  0x19   : > { %1382 = vmatpush3.bf16.msra.mxu1 %v1499_v10 }
  0x1a   : > { %1352 = vmatpush3.bf16.msra.mxu0 %v1484_v3  ;;  %1383 = vmatprep.subr.bf16.mxu1 %v1500_v12 }
  0x1b   : > { %1353 = vmatprep.subr.bf16.mxu0 %v1485_v5 }
  0x1d   : > { %1384 = vmatpush3.bf16.msra.mxu1 %v1500_v12 }
  0x1e   : > { %1354 = vmatpush3.bf16.msra.mxu0 %v1485_v5  ;;  %1385 = vmatprep.subr.bf16.mxu1 %v1501_v13 }
  0x1f   : > { %1355 = vmatprep.subr.bf16.mxu0 %v1486_v6 }
  0x21   : > { %1386 = vmatpush3.bf16.msra.mxu1 %v1501_v13 }
  0x22   : > { %1356 = vmatpush3.bf16.msra.mxu0 %v1486_v6  ;;  %1387 = vmatprep.subr.bf16.mxu1 %v1502_v21 }
  0x23   : > { %1357 = vmatprep.subr.bf16.mxu0 %v1487_v9 }
  0x25   : > { %1388 = vmatpush3.bf16.msra.mxu1 %v1502_v21  ;;  %v1512_v21 = vld [vmem:[%s1825_s6 + $0x20] sm:$0xff]  }
  0x26   : > { %1358 = vmatpush3.bf16.msra.mxu0 %v1487_v9  ;;  %1389 = vmatprep.subr.bf16.mxu1 %v1503_v22 }
  0x27   : > { %1359 = vmatprep.subr.bf16.mxu0 %v1488_v11 }
  0x29   : > { %1390 = vmatpush3.bf16.msra.mxu1 %v1503_v22  ;;  %v1513_v22 = vld [vmem:[%s1825_s6 + $0x18] sm:$0xff]  }
  0x2a   : > { %1360 = vmatpush3.bf16.msra.mxu0 %v1488_v11  ;;  %1391 = vmatprep.subr.bf16.mxu1 %v1504_v23 }
  0x2d   : > { %1362 = vmatmul.mubr.bf16.vlgmr.msra.gmra.mxu0 %v1490_v14  ;;  %1392 = vmatpush3.bf16.msra.mxu1 %v1504_v23 }
  0x2e   : > { %1365 = vmatprep.mubr.bf16.mxu0 %v1491_v15 }
  0x35   : > { %1366 = vmatmul.mubr.bf16.gmra.mxu0 %v1492_v16 }
  0x36   : > { %1369 = vmatprep.mubr.bf16.mxu0 %v1493_v17  ;;  %v1505_v17 = vld [vmem:[%s1720_s9] sm:$0xff]  }
  0x3d   : > { %1370 = vmatmul.mubr.bf16.gmra.mxu0 %v1494_v18  ;;  %v1509_v18 = vld [vmem:[%s1825_s6 + $0x38] sm:$0xff]  }
  0x3e   : > { %1373 = vmatprep.mubr.bf16.mxu0 %v1495_v19  ;;  %v1510_v19 = vld [vmem:[%s1825_s6 + $0x30] sm:$0xff]   ;;  %1433 = vmatprep.subr.bf16.mxu1 %v1509_v18 }
  0x45   : > { %1374 = vmatmul.mubr.bf16.gmra.mxu0 %v1496_v20  ;;  %v1511_v20 = vld [vmem:[%s1825_s6 + $0x28] sm:$0xff]  }
  0x46   : > { %1425 = vmatprep.mubr.bf16.mxu0 %v1505_v17 }
  0xed   : > { %v1363_v24 = vpop.f32.mrf.mxu0 }
  0xee   : > { %v528_v30 = vadd.f32 %v1363_v24, %v1248_v26 }
  0xef   : > { %v519_v25 = vpop.f32.mrf.mxu0 }
  0xf0   : > { %v520_v28 = vadd.f32 %v1248_v26, %v519_v25  ;;  %v584_v37 = vmax.f32 %v528_v30, 0.0 }
  0xf1   : > { %v1364_v27 = vpop.f32.mrf.mxu0 }
  0xf2   : > { %v531_v29 = vadd.f32 %v1364_v27, %v1248_v26  ;;  %v582_v35 = vmax.f32 %v520_v28, 0.0 }
  0xf3   : > { %v522_v31 = vpop.f32.mrf.mxu0 }
  0xf4   : > { %v523_v32 = vadd.f32 %v1248_v26, %v522_v31  ;;  %v585_v33 = vmax.f32 %v531_v29, 0.0 }
  0xf5   : > { %v1367_v34 = vpop.f32.mrf.mxu0 }
  0xf6   : > { %v583_v36 = vmax.f32 %v523_v32, 0.0  ;;  %v599_v40 = vpack.c.bf16 %v585_v33, %v584_v37  ;;  %v544_v44 = vadd.f32 %v1367_v34, %v1248_v26 }
  0xf7   : > { %v535_v38 = vpop.f32.mrf.mxu0 }
  0xf8   : > { %v598_v39 = vpack.c.bf16 %v583_v36, %v582_v35  ;;  %v536_v42 = vadd.f32 %v1248_v26, %v535_v38  ;;  %v588_v51 = vmax.f32 %v544_v44, 0.0 }
  0xf9   : > { %v1368_v41 = vpop.f32.mrf.mxu0 }
  0xfa   : > { %v547_v43 = vadd.f32 %v1368_v41, %v1248_v26  ;;  %1393 = vmatprep.mubr.bf16.mxu1 %v598_v39  ;;  %v586_v49 = vmax.f32 %v536_v42, 0.0 }
  0xfb   : > { %v538_v45 = vpop.f32.mrf.mxu0  ;;  %1394 = vmatmul.mubr.bf16.vlgmr.msra.gmra.mxu1 %v599_v40 }
  0xfc   : > { %v539_v46 = vadd.f32 %v1248_v26, %v538_v45  ;;  %v589_v47 = vmax.f32 %v547_v43, 0.0  ;;  %1434 = vmatpush3.bf16.msra.mxu1 %v1509_v18  ;;  %v1070_v18 = vlaneseq }
  0xfd   : > { %v1371_v48 = vpop.f32.mrf.mxu0  ;;  %1435 = vmatprep.subr.bf16.mxu1 %v1510_v19 }
  0xfe   : > { %v587_v50 = vmax.f32 %v539_v46, 0.0  ;;  %v601_v54 = vpack.c.bf16 %v589_v47, %v588_v51  ;;  %v560_v58 = vadd.f32 %v1371_v48, %v1248_v26  ;;  %v1506_v47 = vld [vmem:[%s1720_s9 + $0x8] sm:$0xff]   ;;  %v1507_v48 = vld [vmem:[%s1720_s9 + $0x10] sm:$0xff]  }
  0xff   : > { %v551_v52 = vpop.f32.mrf.mxu0  ;;  %v1515_v51 = vld [vmem:[%s1825_s6 + $0x8] sm:$0xff]  }
 0x100   : > { %v600_v53 = vpack.c.bf16 %v587_v50, %v586_v49  ;;  %v552_v56 = vadd.f32 %v1248_v26, %v551_v52  ;;  %v592_v1 = vmax.f32 %v560_v58, 0.0  ;;  %1436 = vmatpush3.bf16.msra.mxu1 %v1510_v19  ;;  %v1508_v49 = vld [vmem:[%s1720_s9 + $0x18] sm:$0xff]   ;;  %v1514_v50 = vld [vmem:[%s1825_s6 + $0x10] sm:$0xff]   ;;  %v1516_v52 = vld [vmem:[%s1825_s6] sm:$0xff]   ;;  %v1071_v19 = vand.u32 127, %v1070_v18 }
 0x101   : > { %v1372_v55 = vpop.f32.mrf.mxu0  ;;  %1437 = vmatprep.subr.bf16.mxu1 %v1511_v20 }
 0x102   : > { %v563_v57 = vadd.f32 %v1372_v55, %v1248_v26  ;;  %1397 = vmatprep.mubr.bf16.mxu1 %v600_v53  ;;  %v590_v63 = vmax.f32 %v552_v56, 0.0  ;;  %v1277_v55 = vld [vmem:[%s1824_s5] ss:$0 sm:$0xff]  ;;  %vm1072_vm0 = vcmp.lt.s32.totalorder %v1071_v19, 2 }
 0x103   : > { %v554_v59 = vpop.f32.mrf.mxu0  ;;  %1398 = vmatmul.mubr.bf16.gmra.mxu1 %v601_v54 }
 0x104   : > { %v555_v60 = vadd.f32 %v1248_v26, %v554_v59  ;;  %v593_v61 = vmax.f32 %v563_v57, 0.0  ;;  %1438 = vmatpush3.bf16.msra.mxu1 %v1511_v20  ;;  %v1278_v20 = vld [vmem:[%s1826_s7] ss:$0 sm:$0xff] }
 0x105   : > { %v1375_v62 = vpop.f32.mrf.mxu0  ;;  %1439 = vmatprep.subr.bf16.mxu1 %v1512_v21 }
 0x106   : > { %v591_v0 = vmax.f32 %v555_v60, 0.0  ;;  %v603_v4 = vpack.c.bf16 %v593_v61, %v592_v1  ;;  %v576_v8 = vadd.f32 %v1375_v62, %v1248_v26 }
 0x107   : > { %v567_v2 = vpop.f32.mrf.mxu0 }
 0x108   : > { %v602_v3 = vpack.c.bf16 %v591_v0, %v590_v63  ;;  %v568_v6 = vadd.f32 %v1248_v26, %v567_v2  ;;  %v596_v14 = vmax.f32 %v576_v8, 0.0  ;;  %1440 = vmatpush3.bf16.msra.mxu1 %v1512_v21 }
 0x109   : > { %v1376_v5 = vpop.f32.mrf.mxu0  ;;  %1441 = vmatprep.subr.bf16.mxu1 %v1513_v22 }
 0x10a   : > { %v579_v7 = vadd.f32 %v1376_v5, %v1248_v26  ;;  %1401 = vmatprep.mubr.bf16.mxu1 %v602_v3  ;;  %v594_v12 = vmax.f32 %v568_v6, 0.0 }
 0x10b   : > { %v570_v9 = vpop.f32.mrf.mxu0  ;;  %1402 = vmatmul.mubr.bf16.gmra.mxu1 %v603_v4 }
 0x10c   : > { %v571_v10 = vadd.f32 %v1248_v26, %v570_v9  ;;  %v597_v11 = vmax.f32 %v579_v7, 0.0  ;;  %1442 = vmatpush3.bf16.msra.mxu1 %v1513_v22 }
 0x10d   : > { %1443 = vmatprep.subr.bf16.mxu1 %v1514_v50 }
 0x10e   : > { %v595_v13 = vmax.f32 %v571_v10, 0.0  ;;  %v605_v16 = vpack.c.bf16 %v597_v11, %v596_v14 }
 0x110   : > { %v604_v15 = vpack.c.bf16 %v595_v13, %v594_v12  ;;  %1444 = vmatpush3.bf16.msra.mxu1 %v1514_v50 }
 0x111   : > { %1445 = vmatprep.subr.bf16.mxu1 %v1515_v51 }
 0x112   : > { %1405 = vmatprep.mubr.bf16.mxu1 %v604_v15 }
 0x113   : > { %1406 = vmatmul.mubr.bf16.gmra.mxu1 %v605_v16 }
 0x114   : > { %1446 = vmatpush3.bf16.msra.mxu1 %v1515_v51 }
 0x115   : > { %1447 = vmatprep.subr.bf16.mxu1 %v1516_v52 }
 0x118   : > { %1448 = vmatpush3.bf16.msra.mxu1 %v1516_v52 }
 0x1bb   : > { %v1395_v23 = vpop.f32.mrf.mxu1 }
 0x1bd   : > { %v704_v24 = vpop.f32.mrf.mxu1 }
 0x1bf   : > { %v1396_v25 = vpop.f32.mrf.mxu1 }
 0x1c0   : > { %v784_v45 = vpack.c.bf16 %v1396_v25, %v1395_v23 }
 0x1c1   : > { %v707_v26 = vpop.f32.mrf.mxu1 }
 0x1c2   : > { %v783_v46 = vpack.c.bf16 %v707_v26, %v704_v24 }
 0x1c3   : > { %v1399_v27 = vpop.f32.mrf.mxu1 }
 0x1c5   : > { %v720_v28 = vpop.f32.mrf.mxu1 }
 0x1c7   : > { %v1400_v29 = vpop.f32.mrf.mxu1 }
 0x1c8   : > { %v786_v43 = vpack.c.bf16 %v1400_v29, %v1399_v27 }
 0x1c9   : > { %v723_v30 = vpop.f32.mrf.mxu1 }
 0x1ca   : > { %v785_v44 = vpack.c.bf16 %v723_v30, %v720_v28 }
 0x1cb   : > { %v1403_v31 = vpop.f32.mrf.mxu1 }
 0x1cd   : > { %v736_v32 = vpop.f32.mrf.mxu1 }
 0x1cf   : > { %v1404_v33 = vpop.f32.mrf.mxu1 }
 0x1d0   : > { %v788_v41 = vpack.c.bf16 %v1404_v33, %v1403_v31 }
 0x1d1   : > { %v739_v34 = vpop.f32.mrf.mxu1 }
 0x1d2   : > { %v787_v42 = vpack.c.bf16 %v739_v34, %v736_v32 }
 0x1d3   : > { %v1407_v35 = vpop.f32.mrf.mxu1 }
 0x1d5   : > { %v752_v36 = vpop.f32.mrf.mxu1 }
 0x1d7   : > { %v1408_v37 = vpop.f32.mrf.mxu1 }
 0x1d8   : > { %v790_v38 = vpack.c.bf16 %v1408_v37, %v1407_v35 }
 0x1d9   : > { %v755_v39 = vpop.f32.mrf.mxu1 }
 0x1da   : > { %v789_v40 = vpack.c.bf16 %v755_v39, %v752_v36  ;;  %1409 = vmatprep.subr.bf16.mxu0 %v790_v38 }
 0x1db   : > { %1410 = vmatpush3.bf16.msra.mxu0 %v790_v38 }
 0x1dc   : > { %1411 = vmatprep.subr.bf16.mxu0 %v789_v40 }
 0x1df   : > { %1412 = vmatpush3.bf16.msra.mxu0 %v789_v40 }
 0x1e0   : > { %1413 = vmatprep.subr.bf16.mxu0 %v788_v41 }
 0x1e3   : > { %1414 = vmatpush3.bf16.msra.mxu0 %v788_v41 }
 0x1e4   : > { %1415 = vmatprep.subr.bf16.mxu0 %v787_v42 }
 0x1e7   : > { %1416 = vmatpush3.bf16.msra.mxu0 %v787_v42 }
 0x1e8   : > { %1417 = vmatprep.subr.bf16.mxu0 %v786_v43 }
 0x1eb   : > { %1418 = vmatpush3.bf16.msra.mxu0 %v786_v43 }
 0x1ec   : > { %1419 = vmatprep.subr.bf16.mxu0 %v785_v44 }
 0x1ef   : > { %1420 = vmatpush3.bf16.msra.mxu0 %v785_v44 }
 0x1f0   : > { %1421 = vmatprep.subr.bf16.mxu0 %v784_v45 }
 0x1f3   : > { %1422 = vmatpush3.bf16.msra.mxu0 %v784_v45 }
 0x1f4   : > { %1423 = vmatprep.subr.bf16.mxu0 %v783_v46 }
 0x1f7   : > { %1424 = vmatpush3.bf16.msra.mxu0 %v783_v46 }
 0x1fa   : > { %1426 = vmatmul.mubr.bf16.vlgmr.msra.gmra.mxu0 %v1506_v47 }
 0x1fb   : > { %1429 = vmatprep.mubr.bf16.mxu0 %v1507_v48 }
 0x202   : > { %1430 = vmatmul.mubr.bf16.gmra.mxu0 %v1508_v49 }
 0x2ba   : > { %v1427_v53 = vpop.f32.mrf.mxu0 }
 0x2bb   : > { %v916_v59 = vadd.f32 %v1427_v53, %v1277_v55 }
 0x2bc   : > { %v849_v54 = vpop.f32.mrf.mxu0 }
 0x2bd   : > { %v914_v57 = vadd.f32 %v1277_v55, %v849_v54  ;;  %v924_v2 = vmax.f32 %v916_v59, 0.0 }
 0x2be   : > { %v1428_v56 = vpop.f32.mrf.mxu0 }
 0x2bf   : > { %v917_v58 = vadd.f32 %v1428_v56, %v1277_v55  ;;  %v922_v0 = vmax.f32 %v914_v57, 0.0 }
 0x2c0   : > { %v852_v60 = vpop.f32.mrf.mxu0 }
 0x2c1   : > { %v915_v61 = vadd.f32 %v1277_v55, %v852_v60  ;;  %v925_v62 = vmax.f32 %v917_v58, 0.0 }
 0x2c2   : > { %v1431_v63 = vpop.f32.mrf.mxu0 }
 0x2c3   : > { %v923_v1 = vmax.f32 %v915_v61, 0.0  ;;  %v931_v5 = vpack.c.bf16 %v925_v62, %v924_v2  ;;  %v920_v9 = vadd.f32 %v1431_v63, %v1277_v55 }
 0x2c4   : > { %v865_v3 = vpop.f32.mrf.mxu0 }
 0x2c5   : > { %v930_v4 = vpack.c.bf16 %v923_v1, %v922_v0  ;;  %v918_v7 = vadd.f32 %v1277_v55, %v865_v3  ;;  %v928_v15 = vmax.f32 %v920_v9, 0.0 }
 0x2c6   : > { %v1432_v6 = vpop.f32.mrf.mxu0 }
 0x2c7   : > { %v921_v8 = vadd.f32 %v1432_v6, %v1277_v55  ;;  %1449 = vmatprep.mubr.bf16.mxu1 %v930_v4  ;;  %v926_v13 = vmax.f32 %v918_v7, 0.0 }
 0x2c8   : > { %v868_v10 = vpop.f32.mrf.mxu0  ;;  %1450 = vmatmul.mubr.bf16.vlgmr.msra.gmra.mxu1 %v931_v5 }
 0x2c9   : > { %v919_v11 = vadd.f32 %v1277_v55, %v868_v10  ;;  %v929_v12 = vmax.f32 %v921_v8, 0.0 }
 0x2cb   : > { %v927_v14 = vmax.f32 %v919_v11, 0.0  ;;  %v933_v17 = vpack.c.bf16 %v929_v12, %v928_v15 }
 0x2cd   : > { %v932_v16 = vpack.c.bf16 %v927_v14, %v926_v13 }
 0x2cf   : > { %1453 = vmatprep.mubr.bf16.mxu1 %v932_v16 }
 0x2d0   : > { %1454 = vmatmul.mubr.bf16.gmra.mxu1 %v933_v17 }
 0x388   : > { %v1451_v21 = vpop.f32.mrf.mxu1 }
 0x389   : > { %v1048_v22 = vadd.f32 %v1451_v21, %v1278_v20 }
 0x38a   : > { %v1039_v23 = vpop.f32.mrf.mxu1 }
 0x38b   : > { %v1040_v24 = vadd.f32 %v1278_v20, %v1039_v23  ;;  %v1075_v25 = vsel %vm1072_vm0, %v1048_v22, -1e+30 }
 0x38c   : > { %1085 = vmax.xlane.f32.xlu1 %v1075_v25  ;;  %v1452_v26 = vpop.f32.mrf.mxu1 }
 0x38d   : > { %v1051_v27 = vadd.f32 %v1452_v26, %v1278_v20  ;;  %v1073_v28 = vsel %vm1072_vm0, %v1040_v24, -1e+30 }
 0x38e   : > { %v1042_v29 = vpop.f32.mrf.mxu1  ;;  %1081 = vmax.xlane.f32.xlu0 %v1073_v28 }
 0x38f   : > { %v1043_v30 = vadd.f32 %v1278_v20, %v1042_v29  ;;  %v1076_v31 = vsel %vm1072_vm0, %v1051_v27, -1e+30 }
 0x390   : > { %1087 = vmax.xlane.f32.xlu1 %v1076_v31  ;;  %v1455_v32 = vpop.f32.mrf.mxu1 }
 0x391   : > { %v1074_v33 = vsel %vm1072_vm0, %v1043_v30, -1e+30  ;;  %v1064_v37 = vadd.f32 %v1455_v32, %v1278_v20 }
 0x392   : > { %1083 = vmax.xlane.f32.xlu0 %v1074_v33  ;;  %v1055_v34 = vpop.f32.mrf.mxu1 }
 0x393   : > { %v1056_v35 = vadd.f32 %v1278_v20, %v1055_v34  ;;  %v1079_v43 = vsel %vm1072_vm0, %v1064_v37, -1e+30 }
 0x394   : > { %v1456_v36 = vpop.f32.mrf.mxu1 }
 0x395   : > { %v1077_v38 = vsel %vm1072_vm0, %v1056_v35, -1e+30  ;;  %v1067_v41 = vadd.f32 %v1456_v36, %v1278_v20 }
 0x396   : > { %v1058_v39 = vpop.f32.mrf.mxu1  ;;  %1089 = vmax.xlane.f32.xlu0 %v1077_v38 }
 0x397   : > { %v1059_v40 = vadd.f32 %v1278_v20, %v1058_v39  ;;  %v1080_v44 = vsel %vm1072_vm0, %v1067_v41, -1e+30 }
 0x399   : > { %v1078_v42 = vsel %vm1072_vm0, %v1059_v40, -1e+30 }
 0x39a   : > { %1091 = vmax.xlane.f32.xlu1 %v1078_v42  ;;  %1093 = vmax.xlane.f32.xlu0 %v1079_v43 }
 0x39e   : > { %1095 = vmax.xlane.f32.xlu1 %v1080_v44 }
 0x415   : > { %v1086_v45 = vpop.xlane.xlu1 %1085 }
 0x416   : > { %v1764_v46 = vsub.f32 %v1075_v25, %v1086_v45 }
 0x417   : > { %v1082_v47 = vpop.xlane.xlu0 %1081 }
 0x418   : > { %v1109_v48 = vmul.f32 1.442695, %v1764_v46  ;;  %v1767_v49 = vsub.f32 %v1073_v28, %v1082_v47 }
 0x419   : > { %v1088_v50 = vpop.xlane.xlu1 %1087 }
 0x41a   : > { %1517 = vpow2.f32 %v1109_v48  ;;  %v1105_v51 = vmul.f32 1.442695, %v1767_v49  ;;  %v1770_v52 = vsub.f32 %v1076_v31, %v1088_v50 }
 0x41b   : > { %v1084_v53 = vpop.xlane.xlu0 %1083 }
 0x41c   : > { %v1111_v54 = vmul.f32 1.442695, %v1770_v52  ;;  %v1773_v55 = vsub.f32 %v1074_v33, %v1084_v53  ;;  %1519 = vpow2.f32 %v1105_v51 }
 0x41e   : > { %1521 = vpow2.f32 %v1111_v54  ;;  %v1107_v56 = vmul.f32 1.442695, %v1773_v55 }
 0x41f   : > { %v1090_v57 = vpop.xlane.xlu0 %1089 }
 0x420   : > { %v1776_v58 = vsub.f32 %v1077_v38, %v1090_v57  ;;  %1523 = vpow2.f32 %v1107_v56 }
 0x422   : > { %v1113_v59 = vmul.f32 1.442695, %v1776_v58 }
 0x423   : > { %v1092_v60 = vpop.xlane.xlu1 %1091  ;;  %v1094_v61 = vpop.xlane.xlu0 %1093 }
 0x424   : > { %1525 = vpow2.f32 %v1113_v59  ;;  %v1779_v62 = vsub.f32 %v1078_v42, %v1092_v60  ;;  %v1781_v63 = vsub.f32 %v1079_v43, %v1094_v61 }
 0x426   : > { %v1115_v0 = vmul.f32 1.442695, %v1779_v62  ;;  %v1117_v1 = vmul.f32 1.442695, %v1781_v63 }
 0x427   : > { %v1518_v2 = vpop.eup %1517  ;;  %v1096_v3 = vpop.xlane.xlu1 %1095 }
 0x428   : > { %1527 = vpow2.f32 %v1115_v0  ;;  %v1785_v4 = vsub.f32 %v1080_v44, %v1096_v3  ;;  %1125 = vadd.xlane.f32.xlu0 %v1518_v2 }
 0x429   : > { %1529 = vpow2.f32 %v1117_v1  ;;  %v1520_v5 = vpop.eup %1519 }
 0x42a   : > { %v1119_v6 = vmul.f32 1.442695, %v1785_v4 }
 0x42b   : > { %v1522_v7 = vpop.eup %1521 }
 0x42c   : > { %1531 = vpow2.f32 %v1119_v6  ;;  %1127 = vadd.xlane.f32.xlu1 %v1522_v7  ;;  %1121 = vadd.xlane.f32.xlu0 %v1520_v5 }
 0x42d   : > { %v1524_v8 = vpop.eup %1523 }
 0x430   : > { %1123 = vadd.xlane.f32.xlu1 %v1524_v8 }
 0x431   : > { %v1526_v9 = vpop.eup %1525 }
 0x432   : > { %1129 = vadd.xlane.f32.xlu0 %v1526_v9 }
 0x435   : > { %v1528_v10 = vpop.eup %1527 }
 0x436   : > { %v1530_v11 = vpop.eup %1529  ;;  %1131 = vadd.xlane.f32.xlu1 %v1528_v10 }
 0x437   : > { %1133 = vadd.xlane.f32.xlu0 %v1530_v11 }
 0x439   : > { %v1532_v12 = vpop.eup %1531 }
 0x43a   : > { %1135 = vadd.xlane.f32.xlu1 %v1532_v12 }
 0x4b1   : > { %v1126_v13 = vpop.xlane.xlu0 %1125 }
 0x4b2   : > { %1533 = vlog2.f32 %v1126_v13 }
 0x4b5   : > { %v1128_v14 = vpop.xlane.xlu1 %1127  ;;  %v1122_v15 = vpop.xlane.xlu0 %1121 }
 0x4b6   : > { %1535 = vlog2.f32 %v1128_v14 }
 0x4b7   : > { %1537 = vlog2.f32 %v1122_v15 }
 0x4b9   : > { %v1124_v16 = vpop.xlane.xlu1 %1123 }
 0x4ba   : > { %1539 = vlog2.f32 %v1124_v16 }
 0x4bb   : > { %v1130_v17 = vpop.xlane.xlu0 %1129 }
 0x4bc   : > { %1541 = vlog2.f32 %v1130_v17 }
 0x4bf   : > { %v1534_v18 = vpop.eup %1533  ;;  %v1132_v19 = vpop.xlane.xlu1 %1131 }
 0x4c0   : > { %v1142_v20 = vmul.f32 0.6931472, %v1534_v18  ;;  %1543 = vlog2.f32 %v1132_v19  ;;  %v1134_v21 = vpop.xlane.xlu0 %1133 }
 0x4c1   : > { %1545 = vlog2.f32 %v1134_v21 }
 0x4c2   : > { %v1155_v22 = vsub.f32 %v1764_v46, %v1142_v20 }
 0x4c3   : > { %v1536_v23 = vpop.eup %1535  ;;  %v1136_v24 = vpop.xlane.xlu1 %1135 }
 0x4c4   : > { %v1538_v25 = vpop.eup %1537  ;;  %1163 = vst [vmem:[%s1792_s14 + $0x10] sm:$0xff] %v1155_v22  ;;  %v1144_v26 = vmul.f32 0.6931472, %v1536_v23  ;;  %1547 = vlog2.f32 %v1136_v24 }
 0x4c5   : > { %v1138_v27 = vmul.f32 0.6931472, %v1538_v25 }
 0x4c6   : > { %v1156_v28 = vsub.f32 %v1770_v52, %v1144_v26 }
 0x4c7   : > { %v1540_v29 = vpop.eup %1539  ;;  %v1153_v30 = vsub.f32 %v1767_v49, %v1138_v27 }
 0x4c8   : > { %1164 = vst [vmem:[%s1792_s14 + $0x18] sm:$0xff] %v1156_v28  ;;  %v1140_v31 = vmul.f32 0.6931472, %v1540_v29 }
 0x4c9   : > { %v1542_v32 = vpop.eup %1541  ;;  %1161 = vst [vmem:[%s1792_s14] sm:$0xff] %v1153_v30 }
 0x4ca   : > { %v1154_v33 = vsub.f32 %v1773_v55, %v1140_v31  ;;  %v1146_v34 = vmul.f32 0.6931472, %v1542_v32 }
 0x4cc   : > { %1162 = vst [vmem:[%s1792_s14 + $0x8] sm:$0xff] %v1154_v33  ;;  %v1157_v35 = vsub.f32 %v1776_v58, %v1146_v34 }
 0x4cd   : > { %v1544_v36 = vpop.eup %1543 }
 0x4ce   : > { %v1546_v37 = vpop.eup %1545  ;;  %1165 = vst [vmem:[%s1792_s14 + $0x20] sm:$0xff] %v1157_v35  ;;  %v1148_v38 = vmul.f32 0.6931472, %v1544_v36 }
 0x4cf   : > { %v1150_v39 = vmul.f32 0.6931472, %v1546_v37 }
 0x4d0   : > { %v1158_v40 = vsub.f32 %v1779_v62, %v1148_v38 }
 0x4d1   : > { %v1548_v41 = vpop.eup %1547  ;;  %v1159_v42 = vsub.f32 %v1781_v63, %v1150_v39 }
 0x4d2   : > { %1166 = vst [vmem:[%s1792_s14 + $0x28] sm:$0xff] %v1158_v40  ;;  %v1152_v43 = vmul.f32 0.6931472, %v1548_v41 }
 0x4d3   : > { %1167 = vst [vmem:[%s1792_s14 + $0x30] sm:$0xff] %v1159_v42 }
 0x4d4   : > { %v1160_v44 = vsub.f32 %v1785_v4, %v1152_v43 }
 0x4d6   : > { %1168 = vst [vmem:[%s1792_s14 + $0x38] sm:$0xff] %v1160_v44 }
 0x4d7 PF: > { %s18_s29 = sadd.s32 1, %s1571_s29   ;;  %s1828_s27 = smov %s1567_s28 }
 0x4d8   : > { %p15_p5 = scmp.ge.s32.totalorder %s18_s29, 4   ;;  %s1829_s28 = smov %s1831_s30 }
 0x4da   :  { %17 = sbr.rel (!%p15_p5) target bundleno = 2 (0x2), region = 91 }

</bundles_post_ra>
